<compile_context>
chip_gen: v7x
topology: tpu7x:2x2x1
jax: 0.10.0
libtpu: 0.0.40
codegen_flags: <defaults>
</compile_context>

<pallas_src>
import functools

import jax
import jax.numpy as jnp
from jax.experimental import pallas as pl
from jax.experimental.pallas import tpu as pltpu

LN_EPS = 1e-5  # nn.LayerNorm default


def _round_up(x: int, m: int) -> int:
    return ((x + m - 1) // m) * m


def toy_model_kernel(x_ref, w1t_ref, w2t_ref, beff_ref, o_ref, *, hidden,
                     out_features):
    """One batch tile: fc1 -> ReLU -> LayerNorm (affine folded into fc2) -> fc2."""
    cdt = w1t_ref.dtype

    # fc1: [TB, in] @ [in, HP] -> [TB, HP] with f32 accumulation on the MXU.
    # x arrives in its native dtype (f32) and is cast on the VPU right here.
    h = jnp.dot(x_ref[...].astype(cdt), w1t_ref[...],
                preferred_element_type=jnp.float32)

    # ReLU (VPU). Padded lanes (>= hidden) are exactly 0 (zero weight columns).
    h = jnp.maximum(h, 0.0)

    # LayerNorm statistics over the first `hidden` lanes. Padded lanes of h are
    # exactly zero, so plain sums are correct and var = E[h^2] - mean^2 needs no
    # lane mask.
    inv_h = 1.0 / float(hidden)
    mean = jnp.sum(h, axis=-1, keepdims=True) * inv_h
    ex2 = jnp.sum(h * h, axis=-1, keepdims=True) * inv_h
    var = ex2 - mean * mean
    hn = (h - mean) * jax.lax.rsqrt(var + LN_EPS)

    # fc2 with LN affine folded in: [TB, HP] @ [HP, OP] -> [TB, OP] f32.
    # Padded rows of w2t_eff are zero, so garbage in padded hn lanes is harmless.
    out = jnp.dot(hn.astype(cdt), w2t_ref[...], preferred_element_type=jnp.float32)

    # Store only the useful out_features lanes (narrow HBM writeback).
    o_ref[...] = (out[:, :out_features] + beff_ref[...]).astype(o_ref.dtype)


def prepare_params(w1, w2, gamma, beta, compute_dtype=jnp.bfloat16):
    """One-time weight prep: transpose, 128-lane zero-pad, fold LN affine into fc2.

    w1: [hidden, in_features]   (fc1.weight)
    w2: [out_features, hidden]  (fc2.weight)
    gamma, beta: [hidden]       (ln.weight, ln.bias)
    """
    hidden, in_features = w1.shape
    out_features = w2.shape[0]
    hp = _round_up(hidden, 128)
    op = _round_up(out_features, 128)  # padded only for the MXU; HBM output is narrow

    w1t = jnp.zeros((in_features, hp), compute_dtype)
    w1t = w1t.at[:, :hidden].set(w1.T.astype(compute_dtype))

    w2t_eff_core = gamma[:, None].astype(jnp.float32) * w2.T.astype(jnp.float32)
    w2t_eff = jnp.zeros((hp, op), compute_dtype)
    w2t_eff = w2t_eff.at[:hidden, :out_features].set(
        w2t_eff_core.astype(compute_dtype))

    b_eff = (beta.astype(jnp.float32) @ w2.T.astype(jnp.float32)).reshape(
        1, out_features)
    return w1t, w2t_eff, b_eff


@functools.partial(jax.jit, static_argnames=("hidden", "out_features", "block_b"))
def toy_model_forward(x, w1t_p, w2t_eff, b_eff, *, hidden, out_features,
                      block_b=2048):
    """x: [B, in_features] (native dtype, typically f32); params from prepare_params()."""
    B, in_features = x.shape
    hp = w1t_p.shape[1]
    op = w2t_eff.shape[1]

    # Batch tile: multiple of 8 sublanes, large by default, and capped so the
    # grid has >= 2 steps (keeps both v7x TensorCores busy via "parallel").
    tb = min(block_b, _round_up(B, 8), _round_up(pl.cdiv(B, 2), 8))
    bp = _round_up(B, tb)
    xp = x if bp == B else jnp.pad(x, ((0, bp - B), (0, 0)))
    grid = (bp // tb,)

    kernel = functools.partial(toy_model_kernel, hidden=hidden,
                               out_features=out_features)

    flops = 2 * bp * (in_features * hp + hp * op)
    bytes_accessed = (
        bp * in_features * x.dtype.itemsize        # x stream (native dtype, no wrapper cast)
        + bp * out_features * 4                    # narrow f32 output stream
        + w1t_p.size * w1t_p.dtype.itemsize        # resident weights (read once)
        + w2t_eff.size * w2t_eff.dtype.itemsize
        + b_eff.size * 4)

    out = pl.pallas_call(
        kernel,
        out_shape=jax.ShapeDtypeStruct((bp, out_features), jnp.float32),
        grid=grid,
        in_specs=[
            pl.BlockSpec((tb, in_features), lambda i: (i, 0)),   # x: tiled over batch
            pl.BlockSpec((in_features, hp), lambda i: (0, 0)),   # w1t: resident
            pl.BlockSpec((hp, op), lambda i: (0, 0)),            # w2t_eff: resident
            pl.BlockSpec((1, out_features), lambda i: (0, 0)),   # b_eff: resident
        ],
        out_specs=pl.BlockSpec((tb, out_features), lambda i: (i, 0)),
        compiler_params=pltpu.CompilerParams(
            dimension_semantics=("parallel",)),
        cost_estimate=pl.CostEstimate(
            flops=flops, transcendentals=bp, bytes_accessed=bytes_accessed),
    )(xp, w1t_p, w2t_eff, b_eff)

    return out[:B]


def toy_model_ref(x, w1, w2, gamma, beta):
    """Pure-JAX f32 reference matching the PyTorch ToyModel forward."""
    h = x @ w1.T
    h = jnp.maximum(h, 0.0)
    mean = jnp.mean(h, axis=-1, keepdims=True)
    var = jnp.mean((h - mean) ** 2, axis=-1, keepdims=True)
    hn = (h - mean) / jnp.sqrt(var + LN_EPS) * gamma + beta
    return hn @ w2.T


if __name__ == "__main__":
    in_features = 32
    out_features = 8
    hidden = 10
    batch = 100  # not a multiple of the tile -> exercises padding + 2-step grid

    key = jax.random.PRNGKey(0)
    kx, kw1, kw2, kg, kb = jax.random.split(key, 5)

    x = jax.random.normal(kx, (batch, in_features), dtype=jnp.float32)
    w1 = jax.random.normal(kw1, (hidden, in_features), dtype=jnp.float32) * 0.1
    w2 = jax.random.normal(kw2, (out_features, hidden), dtype=jnp.float32) * 0.1
    gamma = 1.0 + 0.1 * jax.random.normal(kg, (hidden,), dtype=jnp.float32)
    beta = 0.1 * jax.random.normal(kb, (hidden,), dtype=jnp.float32)

    ref = toy_model_ref(x, w1, w2, gamma, beta)

    # f32 compute path (tight check). tb caps at round_up(cdiv(100,2),8)=56 ->
    # grid=(2,) "parallel" steps; 12 padded rows are sliced off.
    w1t32, w2t32, beff32 = prepare_params(w1, w2, gamma, beta,
                                          compute_dtype=jnp.float32)
    out32 = toy_model_forward(x, w1t32, w2t32, beff32,
                              hidden=hidden, out_features=out_features)
    out32 = jax.block_until_ready(out32)
    assert out32.shape == (batch, out_features)
    assert jnp.allclose(out32, ref, atol=5e-4, rtol=5e-4), (
        float(jnp.max(jnp.abs(out32 - ref))))

    # bf16 compute path (all generations: bf16 MXU operands, f32 accumulation &
    # LN statistics; x stays f32 in HBM and is cast in-kernel).
    w1tbf, w2tbf, beffbf = prepare_params(w1, w2, gamma, beta,
                                          compute_dtype=jnp.bfloat16)
    outbf = toy_model_forward(x, w1tbf, w2tbf, beffbf,
                              hidden=hidden, out_features=out_features)
    outbf = jax.block_until_ready(outbf)
    assert outbf.shape == (batch, out_features)
    assert jnp.allclose(outbf, ref, atol=3e-2, rtol=3e-2), (
        float(jnp.max(jnp.abs(outbf - ref))))

    print("KERNEL_OK")
</pallas_src>

<mosaic_0001>
module attributes {stable_mosaic.version = 11 : i64} {
  func.func @toy_model_kernel(%arg0: i32, %arg1: memref<56x32xf32, #tpu.memory_space<vmem>>, %arg2: memref<32x128xf32, #tpu.memory_space<vmem>>, %arg3: memref<128x128xf32, #tpu.memory_space<vmem>>, %arg4: memref<1x8xf32, #tpu.memory_space<vmem>>, %arg5: memref<56x8xf32, #tpu.memory_space<vmem>>) attributes {dimension_semantics = [#tpu.dimension_semantics<parallel>], iteration_bounds = array<i64: 2>, scalar_prefetch = 0 : i64, scratch_operands = 0 : i64, tpu.core_type = #tpu.core_type<tc>, window_params = [{transform_indices = @transform_0, window_bounds = array<i64: 56, 32>}, {pipeline_mode = #tpu.pipeline_mode<synchronous>, transform_indices = @transform_1, window_bounds = array<i64: 32, 128>}, {pipeline_mode = #tpu.pipeline_mode<synchronous>, transform_indices = @transform_2, window_bounds = array<i64: 128, 128>}, {pipeline_mode = #tpu.pipeline_mode<synchronous>, transform_indices = @transform_3, window_bounds = array<i64: 1, 8>}, {transform_indices = @transform_4, window_bounds = array<i64: 56, 8>}]} {
    %c0 = arith.constant 0 : index
    %c0_0 = arith.constant 0 : index
    %0 = vector.load %arg1[%c0, %c0_0] : memref<56x32xf32, #tpu.memory_space<vmem>>, vector<56x32xf32>
    %c0_1 = arith.constant 0 : index
    %c0_2 = arith.constant 0 : index
    %1 = vector.load %arg2[%c0_1, %c0_2] : memref<32x128xf32, #tpu.memory_space<vmem>>, vector<32x128xf32>
    %cst = arith.constant dense<0.000000e+00> : vector<56x128xf32>
    %2 = tpu.matmul %0, %1, %cst {dimension_numbers = #tpu.dot_dimension_numbers<[1], [0], [0], [1], [0, 0, 1, 1], [], []>} : vector<56x32xf32>, vector<32x128xf32>, vector<56x128xf32> -> vector<56x128xf32>
    %cst_3 = arith.constant 0.000000e+00 : f32
    %3 = vector.broadcast %cst_3 : f32 to vector<56x128xf32>
    %4 = arith.maximumf %2, %3 : vector<56x128xf32>
    %cst_4 = arith.constant dense<0.000000e+00> : vector<56xf32>
    %5 = vector.multi_reduction <add>, %4, %cst_4 [1] : vector<56x128xf32> to vector<56xf32>
    %6 = vector.shape_cast %5 : vector<56xf32> to vector<56x1xf32>
    %cst_5 = arith.constant 1.000000e-01 : f32
    %7 = vector.broadcast %cst_5 : f32 to vector<56x1xf32>
    %8 = arith.mulf %6, %7 : vector<56x1xf32>
    %9 = arith.mulf %4, %4 : vector<56x128xf32>
    %cst_6 = arith.constant dense<0.000000e+00> : vector<56xf32>
    %10 = vector.multi_reduction <add>, %9, %cst_6 [1] : vector<56x128xf32> to vector<56xf32>
    %11 = vector.shape_cast %10 : vector<56xf32> to vector<56x1xf32>
    %cst_7 = arith.constant 1.000000e-01 : f32
    %12 = vector.broadcast %cst_7 : f32 to vector<56x1xf32>
    %13 = arith.mulf %11, %12 : vector<56x1xf32>
    %14 = arith.mulf %8, %8 : vector<56x1xf32>
    %15 = arith.subf %13, %14 : vector<56x1xf32>
    %16 = vector.broadcast %8 : vector<56x1xf32> to vector<56x128xf32>
    %17 = arith.subf %4, %16 : vector<56x128xf32>
    %cst_8 = arith.constant 9.99999974E-6 : f32
    %18 = vector.broadcast %cst_8 : f32 to vector<56x1xf32>
    %19 = arith.addf %15, %18 : vector<56x1xf32>
    %20 = math.rsqrt %19 : vector<56x1xf32>
    %21 = vector.broadcast %20 : vector<56x1xf32> to vector<56x128xf32>
    %22 = arith.mulf %17, %21 : vector<56x128xf32>
    %c0_9 = arith.constant 0 : index
    %c0_10 = arith.constant 0 : index
    %23 = vector.load %arg3[%c0_9, %c0_10] : memref<128x128xf32, #tpu.memory_space<vmem>>, vector<128x128xf32>
    %cst_11 = arith.constant dense<0.000000e+00> : vector<56x128xf32>
    %24 = tpu.matmul %22, %23, %cst_11 {dimension_numbers = #tpu.dot_dimension_numbers<[1], [0], [0], [1], [0, 0, 1, 1], [], []>} : vector<56x128xf32>, vector<128x128xf32>, vector<56x128xf32> -> vector<56x128xf32>
    %25 = vector.extract_strided_slice %24 {offsets = [0, 0], sizes = [56, 8], strides = [1, 1]} : vector<56x128xf32> to vector<56x8xf32>
    %c0_12 = arith.constant 0 : index
    %c0_13 = arith.constant 0 : index
    %26 = vector.load %arg4[%c0_12, %c0_13] : memref<1x8xf32, #tpu.memory_space<vmem>>, vector<1x8xf32>
    %27 = vector.broadcast %26 : vector<1x8xf32> to vector<56x8xf32>
    %28 = arith.addf %25, %27 : vector<56x8xf32>
    %c0_14 = arith.constant 0 : index
    %c0_15 = arith.constant 0 : index
    %29 = vector.load %arg5[%c0_14, %c0_15] : memref<56x8xf32, #tpu.memory_space<vmem>>, vector<56x8xf32>
    tpu.vector_store %arg5[%c0_14, %c0_15], %28 {strides = array<i32>} : memref<56x8xf32, #tpu.memory_space<vmem>>, vector<56x8xf32>,
    return
  }
  func.func @transform_0(%arg0: i32) -> (i32, i32) {
    %c0_i32 = arith.constant 0 : i32
    %c0_i32_0 = arith.constant 0 : i32
    return %arg0, %c0_i32 : i32, i32
  }
  func.func @transform_1(%arg0: i32) -> (i32, i32) {
    %c0_i32 = arith.constant 0 : i32
    %c0_i32_0 = arith.constant 0 : i32
    %c0_i32_1 = arith.constant 0 : i32
    return %c0_i32, %c0_i32_0 : i32, i32
  }
  func.func @transform_2(%arg0: i32) -> (i32, i32) {
    %c0_i32 = arith.constant 0 : i32
    %c0_i32_0 = arith.constant 0 : i32
    %c0_i32_1 = arith.constant 0 : i32
    return %c0_i32, %c0_i32_0 : i32, i32
  }
  func.func @transform_3(%arg0: i32) -> (i32, i32) {
    %c0_i32 = arith.constant 0 : i32
    %c0_i32_0 = arith.constant 0 : i32
    %c0_i32_1 = arith.constant 0 : i32
    return %c0_i32, %c0_i32_0 : i32, i32
  }
  func.func @transform_4(%arg0: i32) -> (i32, i32) {
    %c0_i32 = arith.constant 0 : i32
    %c0_i32_0 = arith.constant 0 : i32
    return %arg0, %c0_i32 : i32, i32
  }
}

</mosaic_0001>

<bundles_post_ra>
// kernel: toy_model_forward.1
= control target key start
LH: loop header
LB: loop body
LE: loop exit
PB: predicated region body
PF: predicated region fallthrough
CT: control target
= control target key end

     0   :  { %s866_s15 = smov 0   ;;  %s1055_s0 = inlined_call_operand.vmem [shape: f32[112,32], index: 0, kind: input, shape index: {}]   ;;  %s1056_s1 = inlined_call_operand.vmem [shape: f32[32,128], index: 1, kind: input, shape index: {}]   ;;  %s1057_s2 = inlined_call_operand.vmem [shape: f32[128,128], index: 2, kind: input, shape index: {}]   ;;  %s1058_s3 = inlined_call_operand.vmem [shape: f32[1,8], index: 3, kind: input, shape index: {}]   ;;  %s1059_s4 = inlined_call_operand.vmem [shape: f32[112,8], index: 4, kind: output, shape index: {}]  }
   0x1 LB: > { %s626_s16 = sadd.s32 4294967295, %s836_s15   ;;  %p630_p0 = scmp.ge.s32.totalorder %s836_s15, 1  ;;  %s836_s15 = sphi %s866_s15, %s14_s15  }
   0x2   : > { %p163_p1 = scmp.lt.s32.totalorder %s836_s15, 3 }
   0x4   : > { %p164_p2 = pnand %p630_p0, %p163_p1 }
   0x5   : > { %v208_v0 = vld [vmem:[%s1056_s1] sm:$0xff] (!%p164_p2)  ;;  %v209_v1 = vld [vmem:[%s1056_s1 + $0x8] sm:$0xff] (!%p164_p2)  ;;  %v210_v2 = vld [vmem:[%s1056_s1 + $0x10] sm:$0xff] (!%p164_p2)  ;;  %v838_v3 = vmov (!%p164_p2), 0.0|0.0   ;;  %vm839_vm0 = vmmov (!%p164_p2), 0   ;;  %v840_v6 = vmov (!%p164_p2), 0.0  }
   0x6   : > { %167 = sbr.rel (%p164_p2) target bundleno = 643 (0x283), region = 36  ;;  %759 = vmatprep.subr.bf16.mxu0 (!%p164_p2), %v838_v3  ;;  %v760_v4 = vpack.c.bf16 (!%p164_p2), %v209_v1, %v208_v0  ;;  %v211_v5 = vld [vmem:[%s1056_s1 + $0x18] sm:$0xff] (!%p164_p2)  ;;  %685 = vmatprep.mubr.msk.f32.mxu0 (!%p164_p2), %vm839_vm0, %v840_v6  ;;  %vm212_vm1 = vcmask (!%p164_p2), 261120   ;;  %v432_v27 = vld [vmem:[%s1057_s2] sm:$0xff] (!%p164_p2)  ;;  %v433_v28 = vld [vmem:[%s1057_s2 + $0x8] sm:$0xff] (!%p164_p2)  ;;  %vm562_vm2 = vcmask (!%p164_p2), 64512  }
   0x7   : > { %s189_s25 = smul.u32 (!%p164_p2), 7, %s626_s16  ;;  %789 = vmatprep.subr.bf16.mxu1 (!%p164_p2), %v838_v3  ;;  %744 = vmatprep.mubr.msk.f32.mxu1 (!%p164_p2), %vm839_vm0, %v840_v6  ;;  %v763_v7 = vpack.c.bf16 (!%p164_p2), %v211_v5, %v210_v2  ;;  %v766_v29 = vpack.c.bf16 (!%p164_p2), %v433_v28, %v432_v27  ;;  %v434_v34 = vld [vmem:[%s1057_s2 + $0x10] sm:$0xff] (!%p164_p2)  ;;  %v435_v35 = vld [vmem:[%s1057_s2 + $0x18] sm:$0xff] (!%p164_p2)  ;;  %v436_v41 = vld [vmem:[%s1057_s2 + $0x20] sm:$0xff] (!%p164_p2) }
   0x8   : > { %761 = vmatpush3.bf16.msra.mxu0 (!%p164_p2), %v760_v4  ;;  %v769_v37 = vpack.c.bf16 (!%p164_p2), %v435_v35, %v434_v34  ;;  %v437_v42 = vld [vmem:[%s1057_s2 + $0x28] sm:$0xff] (!%p164_p2)  ;;  %v438_v48 = vld [vmem:[%s1057_s2 + $0x30] sm:$0xff] (!%p164_p2)  ;;  %v439_v49 = vld [vmem:[%s1057_s2 + $0x38] sm:$0xff] (!%p164_p2) }
   0x9   : > { %p190_p3 = scmp.lt.s32.totalorder (!%p164_p2), %s189_s25, 13  ;;  %762 = vmatprep.subr.bf16.mxu0 (!%p164_p2), %v838_v3  ;;  %797 = vmatpush3.bf16.msra.mxu1 (!%p164_p2), %v766_v29  ;;  %v772_v44 = vpack.c.bf16 (!%p164_p2), %v437_v42, %v436_v41  ;;  %v775_v50 = vpack.c.bf16 (!%p164_p2), %v439_v49, %v438_v48  ;;  %v440_v53 = vld [vmem:[%s1057_s2 + $0x40] sm:$0xff] (!%p164_p2)  ;;  %v441_v54 = vld [vmem:[%s1057_s2 + $0x48] sm:$0xff] (!%p164_p2)  ;;  %v442_v57 = vld [vmem:[%s1057_s2 + $0x50] sm:$0xff] (!%p164_p2) }
   0xa   : > { %790 = vmatprep.subr.bf16.mxu1 (!%p164_p2), %v838_v3  ;;  %v778_v56 = vpack.c.bf16 (!%p164_p2), %v441_v54, %v440_v53  ;;  %v443_v58 = vld [vmem:[%s1057_s2 + $0x58] sm:$0xff] (!%p164_p2)  ;;  %v444_v61 = vld [vmem:[%s1057_s2 + $0x60] sm:$0xff] (!%p164_p2)  ;;  %v445_v62 = vld [vmem:[%s1057_s2 + $0x68] sm:$0xff] (!%p164_p2) }
   0xb   : > { %v781_v59 = vpack.c.bf16 (!%p164_p2), %v443_v58, %v442_v57  ;;  %v784_v63 = vpack.c.bf16 (!%p164_p2), %v445_v62, %v444_v61  ;;  %v446_v0 = vld [vmem:[%s1057_s2 + $0x70] sm:$0xff] (!%p164_p2)  ;;  %v447_v1 = vld [vmem:[%s1057_s2 + $0x78] sm:$0xff] (!%p164_p2) }
   0xc   : > { %764 = vmatpush3.bf16.msra.mxu0 (!%p164_p2), %v763_v7  ;;  %v787_v2 = vpack.c.bf16 (!%p164_p2), %v447_v1, %v446_v0 }
   0xd   : > { %s1061_s25 = smov (!%p190_p3, %s189_s25), 13  ;;  %765 = vmatprep.subr.bf16.mxu0 %v838_v3  ;;  %798 = vmatpush3.bf16.msra.mxu1 %v769_v37 }
   0xe   : > { %s631_s26 = sshll.u32 %s1061_s25, 3  ;;  %791 = vmatprep.subr.bf16.mxu1 %v838_v3 }
   0xf   : > { %s193_s29 = scalar_lea.vmem %s1055_s0, %s631_s26  ;;  %s199_s18 = scalar_lea.vmem %s1059_s4, %s631_s26 }
  0x10   : > { %v201_v8 = vld [vmem:[%s193_s29] sm:$0xff]  ;;  %v202_v9 = vld [vmem:[%s193_s29 + $0x8] sm:$0xff]  ;;  %v203_v10 = vld [vmem:[%s193_s29 + $0x10] sm:$0xff] }
  0x11   : > { %686 = vmatmul.mubr.msk.f32.vlgmr.msra.gmra.mrb[0].mxu0 %vm212_vm1, %v201_v8  ;;  %v204_v11 = vld [vmem:[%s193_s29 + $0x18] sm:$0xff]  ;;  %v205_v12 = vld [vmem:[%s193_s29 + $0x20] sm:$0xff]  ;;  %v206_v13 = vld [vmem:[%s193_s29 + $0x28] sm:$0xff]  ;;  %799 = vmatpush3.bf16.msra.mxu1 %v772_v44 }
  0x12   : > { %688 = vmatprep.mubr.msk.f32.mxu0 %vm839_vm0, %v840_v6  ;;  %v207_v14 = vld [vmem:[%s193_s29 + $0x30] sm:$0xff]  ;;  %767 = vmatpush3.bf16.msra.mxu0 %v766_v29 }
  0x13   : > { %768 = vmatprep.subr.bf16.mxu0 %v838_v3  ;;  %792 = vmatprep.subr.bf16.mxu1 %v838_v3 }
  0x15   : > { %689 = vmatmul.mubr.msk.f32.gmra.mrb[2].mxu0 %vm212_vm1, %v202_v9  ;;  %800 = vmatpush3.bf16.msra.mxu1 %v775_v50 }
  0x16   : > { %691 = vmatprep.mubr.msk.f32.mxu0 %vm839_vm0, %v840_v6  ;;  %770 = vmatpush3.bf16.msra.mxu0 %v769_v37 }
  0x17   : > { %771 = vmatprep.subr.bf16.mxu0 %v838_v3  ;;  %793 = vmatprep.subr.bf16.mxu1 %v838_v3 }
  0x19   : > { %692 = vmatmul.mubr.msk.f32.gmra.mrb[4].mxu0 %vm212_vm1, %v203_v10  ;;  %801 = vmatpush3.bf16.msra.mxu1 %v778_v56 }
  0x1a   : > { %694 = vmatprep.mubr.msk.f32.mxu0 %vm839_vm0, %v840_v6  ;;  %773 = vmatpush3.bf16.msra.mxu0 %v772_v44 }
  0x1b   : > { %774 = vmatprep.subr.bf16.mxu0 %v838_v3  ;;  %794 = vmatprep.subr.bf16.mxu1 %v838_v3 }
  0x1d   : > { %695 = vmatmul.mubr.msk.f32.gmra.mrb[6].mxu0 %vm212_vm1, %v204_v11  ;;  %802 = vmatpush3.bf16.msra.mxu1 %v781_v59 }
  0x1e   : > { %697 = vmatprep.mubr.msk.f32.mxu0 %vm839_vm0, %v840_v6  ;;  %776 = vmatpush3.bf16.msra.mxu0 %v775_v50 }
  0x1f   : > { %777 = vmatprep.subr.bf16.mxu0 %v838_v3  ;;  %795 = vmatprep.subr.bf16.mxu1 %v838_v3 }
  0x21   : > { %698 = vmatmul.mubr.msk.f32.gmra.mrb[8].mxu0 %vm212_vm1, %v205_v12  ;;  %803 = vmatpush3.bf16.msra.mxu1 %v784_v63 }
  0x22   : > { %700 = vmatprep.mubr.msk.f32.mxu0 %vm839_vm0, %v840_v6  ;;  %779 = vmatpush3.bf16.msra.mxu0 %v778_v56 }
  0x23   : > { %780 = vmatprep.subr.bf16.mxu0 %v838_v3  ;;  %796 = vmatprep.subr.bf16.mxu1 %v838_v3 }
  0x25   : > { %701 = vmatmul.mubr.msk.f32.gmra.mrb[10].mxu0 %vm212_vm1, %v206_v13  ;;  %804 = vmatpush3.bf16.msra.mxu1 %v787_v2 }
  0x26   : > { %703 = vmatprep.mubr.msk.f32.mxu0 %vm839_vm0, %v840_v6  ;;  %782 = vmatpush3.bf16.msra.mxu0 %v781_v59 }
  0x27   : > { %783 = vmatprep.subr.bf16.mxu0 %v838_v3 }
  0x29   : > { %704 = vmatmul.mubr.msk.f32.gmra.mrb[12].mxu0 %vm212_vm1, %v207_v14 }
  0x2a   : > { %738 = vmatprep.mubr.msk.f32.mxu0 %vm839_vm0, %v840_v6  ;;  %785 = vmatpush3.bf16.msra.mxu0 %v784_v63 }
  0x2b   : > { %786 = vmatprep.subr.bf16.mxu0 %v838_v3 }
  0x2e   : > { %788 = vmatpush3.bf16.msra.mxu0 %v787_v2 }
  0xe4   : > { %v300_v15 = vpop.f32.mrb[0].mxu0 }
  0xe5   : > { %v923_v16 = vmax.f32 %v300_v15, 0.0  ;;  %v687_v17 = vpop.f32.mrb[1].mxu0 }
  0xe7   : > { %341 = vadd.xlane.f32.xlu0 %v923_v16  ;;  %v362_v39 = vmul.f32 %v923_v16, %v923_v16 }
  0xe8   : > { %v305_v18 = vpop.f32.mrb[2].mxu0 }
  0xe9   : > { %v690_v19 = vpop.f32.mrb[3].mxu0  ;;  %v967_v46 = vmax.f32 %v305_v18, 0.0 }
  0xeb   : > { %v363_v51 = vmul.f32 %v967_v46, %v967_v46 }
  0xec   : > { %v310_v20 = vpop.f32.mrb[4].mxu0 }
  0xed   : > { %v926_v21 = vmax.f32 %v310_v20, 0.0  ;;  %v693_v22 = vpop.f32.mrb[5].mxu0 }
  0xef   : > { %345 = vadd.xlane.f32.xlu0 %v926_v21  ;;  %v364_v26 = vmul.f32 %v926_v21, %v926_v21 }
  0xf0   : > { %v315_v23 = vpop.f32.mrb[6].mxu0 }
  0xf1   : > { %v929_v24 = vmax.f32 %v315_v23, 0.0  ;;  %v696_v25 = vpop.f32.mrb[7].mxu0 }
  0xf3   : > { %373 = vadd.xlane.f32.xlu0 %v364_v26  ;;  %347 = vadd.xlane.f32.xlu1 %v929_v24  ;;  %v365_v33 = vmul.f32 %v929_v24, %v929_v24 }
  0xf4   : > { %v320_v30 = vpop.f32.mrb[8].mxu0 }
  0xf5   : > { %v940_v31 = vmax.f32 %v320_v30, 0.0  ;;  %v699_v32 = vpop.f32.mrb[9].mxu0 }
  0xf7   : > { %375 = vadd.xlane.f32.xlu1 %v365_v33  ;;  %349 = vadd.xlane.f32.xlu0 %v940_v31  ;;  %v366_v36 = vmul.f32 %v940_v31, %v940_v31 }
  0xf8   : > { %v325_v38 = vpop.f32.mrb[10].mxu0 }
  0xf9   : > { %v702_v40 = vpop.f32.mrb[11].mxu0  ;;  %v965_v43 = vmax.f32 %v325_v38, 0.0 }
  0xfb   : > { %369 = vadd.xlane.f32.xlu0 %v362_v39  ;;  %377 = vadd.xlane.f32.xlu1 %v366_v36  ;;  %v367_v52 = vmul.f32 %v965_v43, %v965_v43 }
  0xfc   : > { %v330_v45 = vpop.f32.mrb[12].mxu0 }
  0xfd   : > { %v705_v47 = vpop.f32.mrb[13].mxu0  ;;  %v991_v55 = vmax.f32 %v330_v45, 0.0 }
  0xff   : > { %343 = vadd.xlane.f32.xlu0 %v967_v46  ;;  %351 = vadd.xlane.f32.xlu1 %v965_v43  ;;  %v368_v60 = vmul.f32 %v991_v55, %v991_v55 }
 0x103   : > { %371 = vadd.xlane.f32.xlu0 %v363_v51  ;;  %379 = vadd.xlane.f32.xlu1 %v367_v52 }
 0x107   : > { %353 = vadd.xlane.f32.xlu1 %v991_v55 }
 0x10b   : > { %381 = vadd.xlane.f32.xlu1 %v368_v60 }
 0x174   : > { %v342_v4 = vpop.xlane.xlu0 %341 }
 0x175   : > { %v355_v14 = vmul.f32 0.1, %v342_v4 }
 0x177   : > { %v390_v27 = vmul.f32 %v355_v14, %v355_v14  ;;  %v404_v60 = vsub.f32 %v923_v16, %v355_v14 }
 0x17c   : > { %v346_v5 = vpop.xlane.xlu0 %345 }
 0x17d   : > { %v357_v7 = vmul.f32 0.1, %v346_v5 }
 0x17f   : > { %v392_v10 = vmul.f32 %v357_v7, %v357_v7  ;;  %v406_v40 = vsub.f32 %v926_v21, %v357_v7 }
 0x180   : > { %v374_v8 = vpop.xlane.xlu0 %373  ;;  %v348_v9 = vpop.xlane.xlu1 %347 }
 0x181   : > { %v385_v11 = vmul.f32 0.1, %v374_v8  ;;  %v358_v12 = vmul.f32 0.1, %v348_v9 }
 0x183   : > { %v399_v13 = vsub.f32 %v385_v11, %v392_v10  ;;  %v393_v19 = vmul.f32 %v358_v12, %v358_v12  ;;  %v407_v53 = vsub.f32 %v929_v24, %v358_v12 }
 0x184   : > { %v376_v15 = vpop.xlane.xlu1 %375  ;;  %v350_v17 = vpop.xlane.xlu0 %349 }
 0x185   : > { %v413_v18 = vadd.f32 1e-05, %v399_v13  ;;  %v386_v20 = vmul.f32 0.1, %v376_v15  ;;  %v359_v22 = vmul.f32 0.1, %v350_v17 }
 0x187   : > { %816 = vrsqrt.f32 %v413_v18  ;;  %v400_v3 = vsub.f32 %v386_v20, %v393_v19  ;;  %v394_v23 = vmul.f32 %v359_v22, %v359_v22  ;;  %v408_v63 = vsub.f32 %v940_v31, %v359_v22 }
 0x188   : > { %v370_v25 = vpop.xlane.xlu0 %369  ;;  %v378_v26 = vpop.xlane.xlu1 %377 }
 0x189   : > { %v414_v28 = vadd.f32 1e-05, %v400_v3  ;;  %v383_v29 = vmul.f32 0.1, %v370_v25  ;;  %v387_v30 = vmul.f32 0.1, %v378_v26 }
 0x18b   : > { %818 = vrsqrt.f32 %v414_v28  ;;  %v397_v32 = vsub.f32 %v383_v29, %v390_v27  ;;  %v401_v33 = vsub.f32 %v387_v30, %v394_v23 }
 0x18c   : > { %v344_v34 = vpop.xlane.xlu0 %343  ;;  %v352_v35 = vpop.xlane.xlu1 %351 }
 0x18d   : > { %v411_v36 = vadd.f32 1e-05, %v397_v32  ;;  %v415_v37 = vadd.f32 1e-05, %v401_v33  ;;  %v356_v38 = vmul.f32 0.1, %v344_v34 }
 0x18e   : > { %v360_v39 = vmul.f32 0.1, %v352_v35 }
 0x18f   : > { %820 = vrsqrt.f32 %v411_v36  ;;  %v391_v45 = vmul.f32 %v356_v38, %v356_v38  ;;  %v405_v16 = vsub.f32 %v967_v46, %v356_v38  ;;  %v640_v46 = vld [vmem:[%s1058_s3] ss:$0 sm:$0xff] }
 0x190   : > { %822 = vrsqrt.f32 %v415_v37  ;;  %v372_v41 = vpop.xlane.xlu0 %371  ;;  %v380_v42 = vpop.xlane.xlu1 %379  ;;  %v395_v47 = vmul.f32 %v360_v39, %v360_v39  ;;  %v409_v8 = vsub.f32 %v965_v43, %v360_v39 }
 0x191   : > { %v817_v44 = vpop.eup %816  ;;  %v384_v48 = vmul.f32 0.1, %v372_v41  ;;  %v388_v49 = vmul.f32 0.1, %v380_v42 }
 0x192   : > { %v427_v50 = vmul.f32 %v817_v44, %v406_v40 }
 0x193   : > { %v398_v51 = vsub.f32 %v384_v48, %v391_v45  ;;  %v402_v52 = vsub.f32 %v388_v49, %v395_v47 }
 0x194   : > { %745 = vmatmul.mubr.f32.vlgmr.msra.gmra.mrb[0].mxu1 %v427_v50  ;;  %v354_v54 = vpop.xlane.xlu1 %353 }
 0x195   : > { %v819_v56 = vpop.eup %818  ;;  %v412_v57 = vadd.f32 1e-05, %v398_v51  ;;  %v416_v58 = vadd.f32 1e-05, %v402_v52  ;;  %v361_v59 = vmul.f32 0.1, %v354_v54  ;;  %747 = vmatprep.mubr.msk.f32.mxu1 %vm839_vm0, %v840_v6 }
 0x196   : > { %v428_v21 = vmul.f32 %v819_v56, %v407_v53 }
 0x197   : > { %824 = vrsqrt.f32 %v412_v57  ;;  %v396_v24 = vmul.f32 %v361_v59, %v361_v59  ;;  %v410_v12 = vsub.f32 %v991_v55, %v361_v59 }
 0x198   : > { %826 = vrsqrt.f32 %v416_v58  ;;  %748 = vmatmul.mubr.f32.gmra.mrb[2].mxu1 %v428_v21  ;;  %v382_v61 = vpop.xlane.xlu1 %381 }
 0x199   : > { %v821_v62 = vpop.eup %820  ;;  %v389_v0 = vmul.f32 0.1, %v382_v61  ;;  %750 = vmatprep.mubr.msk.f32.mxu1 %vm839_vm0, %v840_v6 }
 0x19a   : > { %v823_v1 = vpop.eup %822  ;;  %v425_v2 = vmul.f32 %v821_v62, %v404_v60 }
 0x19b   : > { %v403_v4 = vsub.f32 %v389_v0, %v396_v24  ;;  %v429_v5 = vmul.f32 %v823_v1, %v408_v63 }
 0x19c   : > { %739 = vmatmul.mubr.f32.vlgmr.msra.gmra.mrb[14].mxu0 %v425_v2 }
 0x19d   : > { %v417_v7 = vadd.f32 1e-05, %v403_v4  ;;  %751 = vmatmul.mubr.f32.gmra.mrb[4].mxu1 %v429_v5  ;;  %741 = vmatprep.mubr.msk.f32.mxu0 %vm839_vm0, %v840_v6 }
 0x19e   : > { %753 = vmatprep.mubr.msk.f32.mxu1 %vm839_vm0, %v840_v6 }
 0x19f   : > { %828 = vrsqrt.f32 %v417_v7 }
 0x1a1   : > { %v825_v31 = vpop.eup %824 }
 0x1a2   : > { %v827_v9 = vpop.eup %826  ;;  %v426_v10 = vmul.f32 %v825_v31, %v405_v16 }
 0x1a3   : > { %v430_v11 = vmul.f32 %v827_v9, %v409_v8 }
 0x1a4   : > { %742 = vmatmul.mubr.f32.gmra.mrb[16].mxu0 %v426_v10 }
 0x1a5   : > { %754 = vmatmul.mubr.f32.gmra.mrb[6].mxu1 %v430_v11 }
 0x1a6   : > { %756 = vmatprep.mubr.msk.f32.mxu1 %vm839_vm0, %v840_v6 }
 0x1a9   : > { %v829_v13 = vpop.eup %828 }
 0x1aa   : > { %v431_v14 = vmul.f32 %v829_v13, %v410_v12 }
 0x1ac   : > { %757 = vmatmul.mubr.f32.gmra.mrb[8].mxu1 %v431_v14 }
 0x267   : > { %v524_v43 = vpop.f32.mrb[0].mxu1 }
 0x268   : > { %v557_v15 = vadd.f32 %v640_v46, %v524_v43  ;;  %v746_v17 = vpop.f32.mrb[1].mxu1 }
 0x26a   : > { %565 = vst.msk [vmem:[%s199_s18 + $0x10] sm:$0xff] %vm562_vm2, %v557_v15 }
 0x26b   : > { %v529_v6 = vpop.f32.mrb[2].mxu1 }
 0x26c   : > { %v558_v55 = vadd.f32 %v640_v46, %v529_v6  ;;  %v749_v18 = vpop.f32.mrb[3].mxu1 }
 0x26e   : > { %566 = vst.msk [vmem:[%s199_s18 + $0x18] sm:$0xff] %vm562_vm2, %v558_v55 }
 0x26f   : > { %v514_v19 = vpop.f32.mrb[14].mxu0 }
 0x270   : > { %v555_v20 = vadd.f32 %v640_v46, %v514_v19  ;;  %v534_v22 = vpop.f32.mrb[4].mxu1  ;;  %v740_v3 = vpop.f32.mrb[15].mxu0 }
 0x271   : > { %v559_v23 = vadd.f32 %v640_v46, %v534_v22  ;;  %v752_v25 = vpop.f32.mrb[5].mxu1 }
 0x272   : > { %563 = vst.msk [vmem:[%s199_s18] sm:$0xff] %vm562_vm2, %v555_v20 }
 0x273   : > { %567 = vst.msk [vmem:[%s199_s18 + $0x20] sm:$0xff] %vm562_vm2, %v559_v23 }
 0x277   : > { %v519_v26 = vpop.f32.mrb[16].mxu0 }
 0x278   : > { %v556_v27 = vadd.f32 %v640_v46, %v519_v26  ;;  %v539_v28 = vpop.f32.mrb[6].mxu1  ;;  %v743_v29 = vpop.f32.mrb[17].mxu0 }
 0x279   : > { %v560_v30 = vadd.f32 %v640_v46, %v539_v28  ;;  %v755_v32 = vpop.f32.mrb[7].mxu1 }
 0x27a   : > { %564 = vst.msk [vmem:[%s199_s18 + $0x8] sm:$0xff] %vm562_vm2, %v556_v27 }
 0x27b   : > { %568 = vst.msk [vmem:[%s199_s18 + $0x28] sm:$0xff] %vm562_vm2, %v560_v30 }
 0x27f   : > { %v544_v33 = vpop.f32.mrb[8].mxu1 }
 0x280   : > { %v561_v34 = vadd.f32 %v640_v46, %v544_v33  ;;  %v758_v35 = vpop.f32.mrb[9].mxu1 }
 0x282   : > { %569 = vst.msk [vmem:[%s199_s18 + $0x30] sm:$0xff] %vm562_vm2, %v561_v34 }
 0x283 PF: > { %s14_s15 = sadd.s32 1, %s836_s15  }
 0x284   : > { %p11_p4 = scmp.ge.s32.totalorder %s14_s15, 4  }
 0x286   :  { %13 = sbr.rel (!%p11_p4) target bundleno = 1 (0x1), region = 66 }

</bundles_post_ra>
